<compile_context>
chip_gen: v5e
topology: v5e:2x2
jax: 0.10.0
libtpu: 0.0.40
codegen_flags: <defaults>
</compile_context>

<pallas_src>
import functools

import jax
import jax.numpy as jnp
from jax import lax
from jax.experimental import pallas as pl
from jax.experimental.pallas import tpu as pltpu

EPS = 1e-5
LANE = 128


def _round_up(x, m):
    return -(-x // m) * m


def _padded_bytes(shape, itemsize=4):
    """f32 VMEM footprint with (8, 128) layout padding on the trailing two dims."""
    s = list(shape)
    if len(s) >= 1:
        s[-1] = _round_up(s[-1], 128)
    if len(s) >= 2:
        s[-2] = _round_up(s[-2], 8)
    n = 1
    for v in s:
        n *= v
    return n * itemsize


def _compiler_params(block_shapes, scratch_shapes=(), extra_bytes=0):
    """Generation-aware scoped-VMEM budget: double-buffered blocks + scratch + slack,
    clamped to 3/4 of physical per-core VMEM (v7x: 64 MiB, v5e/v6e: 128 MiB)."""
    need = sum(2 * _padded_bytes(s) for s in block_shapes)
    need += sum(_padded_bytes(s) for s in scratch_shapes)
    need += extra_bytes + (4 << 20)
    try:
        cap = int(getattr(pltpu.get_tpu_info(), "vmem_capacity_bytes", 64 << 20))
    except Exception:
        cap = 64 << 20
    limit = int(min(max(need, 16 << 20), cap * 3 // 4))
    return pltpu.CompilerParams(dimension_semantics=("parallel",),
                                vmem_limit_bytes=limit)


# --------------------------------- kernels ------------------------------------------------

def _conv1_kernel(p_ref, w1_ref, h1_ref, st_ref):
    # conv1 as one lane-dense im2col matmul; emit raw activation + per-image BN partial stats.
    h = jnp.dot(p_ref[...], w1_ref[...], preferred_element_type=jnp.float32)   # (HW, Cop)
    h1_ref[...] = h
    s = jnp.sum(h, axis=0, keepdims=True)
    ss = jnp.sum(h * h, axis=0, keepdims=True)
    st_ref[...] = jnp.concatenate([s, ss], axis=0)[None]                        # (1, 2, Cop)


def _conv2_kernel(h1_ref, sc1_ref, sh1_ref, w2_ref, h2_ref, st_ref, pad_ref,
                  *, H, W, Cop, d):
    Hp, Wp = H + 2 * d, W + 2 * d
    # BN1 apply (folded per-channel scale/shift) + ReLU.
    a = jnp.maximum(h1_ref[...] * sc1_ref[...] + sh1_ref[...], 0.0)             # (HW, Cop)

    # Spatial re-pad for conv2: zero only the d-wide border ring.  The scratch persists across
    # grid iterations, so the ring is re-zeroed every step; the interior is fully overwritten.
    pad_ref[0:d, :, :] = jnp.zeros((d, Wp, Cop), jnp.float32)
    pad_ref[H + d:Hp, :, :] = jnp.zeros((d, Wp, Cop), jnp.float32)
    pad_ref[d:d + H, 0:d, :] = jnp.zeros((H, d, Cop), jnp.float32)
    pad_ref[d:d + H, W + d:Wp, :] = jnp.zeros((H, d, Cop), jnp.float32)
    pad_ref[d:d + H, d:d + W, :] = a.reshape(H, W, Cop)

    # conv2 as nine accumulated K=Cop dots on shifted windows (no big im2col scratch).
    acc = jnp.zeros((H * W, Cop), jnp.float32)
    for k in range(9):
        ky, kx = divmod(k, 3)
        win = pad_ref[ky * d:ky * d + H, kx * d:kx * d + W, :].reshape(H * W, Cop)
        acc = acc + jnp.dot(win, w2_ref[k], preferred_element_type=jnp.float32)

    h2_ref[...] = acc
    s = jnp.sum(acc, axis=0, keepdims=True)
    ss = jnp.sum(acc * acc, axis=0, keepdims=True)
    st_ref[...] = jnp.concatenate([s, ss], axis=0)[None]


def _finalize_kernel(h2_ref, p_ref, wsk_ref, bsk_ref, sc2_ref, sh2_ref, o_ref, *, Cout):
    # 1x1 skip from the centre-tap columns of the conv1 patches (wsk_full is zero elsewhere).
    skip = jnp.dot(p_ref[...], wsk_ref[...],
                   preferred_element_type=jnp.float32) + bsk_ref[...]
    y = jnp.maximum(h2_ref[...] * sc2_ref[...] + sh2_ref[...] + skip, 0.0)      # (HW, Cop)
    o_ref[...] = y[:, :Cout]                                                    # Cout-wide store


# --------------------------------- wrapper ------------------------------------------------

def _fold_bn(stats, gamma_p, beta_p, count):
    # TODO(synk): one-pass E[x^2]-E[x]^2 can cancel at production scale; use a shifted /
    # compensated formulation (or an extra stats pass) if the tolerance tightens.
    mean = stats[0] / count
    var = jnp.maximum(stats[1] / count - mean * mean, 0.0)
    scale = gamma_p * lax.rsqrt(var + EPS)
    shift = beta_p - mean * scale
    return scale[None, :], shift[None, :]


def residual_block(x_nchw, params, dilation=1):
    """Pallas implementation of ResidualBlock.forward; x is NCHW, returns NCHW."""
    (w1, b1, g1, be1, w2, b2, g2, be2, wsk, bsk) = params
    del b1, b2  # conv biases feeding training-mode BN are mathematically irrelevant
    N, Cin, H, W = x_nchw.shape
    Cout = w1.shape[-1]
    d = dilation
    Hp, Wp = H + 2 * d, W + 2 * d
    HW = H * W
    NHW = N * HW
    Cop = _round_up(Cout, LANE)              # lane-dense channel dim for matmul operands
    K1 = 9 * Cin
    K1p = _round_up(K1, LANE)                # lane-dense im2col depth

    assert HW % 8 == 0, "H*W must be a multiple of 8 (sublane tiling)"

    if wsk is None:                          # nn.Identity skip when in_ch == out_ch
        assert Cin == Cout
        wsk = jnp.eye(Cin, dtype=jnp.float32)
        bsk = jnp.zeros((Cout,), jnp.float32)

    # ---- wrapper-side im2col for conv1 (hoisted out of the kernel; pure XLA) ---------------
    x = jnp.transpose(x_nchw, (0, 2, 3, 1)).astype(jnp.float32)                  # NHWC
    xpad = jnp.pad(x, ((0, 0), (d, d), (d, d), (0, 0)))
    taps = [xpad[:, ky * d:ky * d + H, kx * d:kx * d + W, :]
            for ky in range(3) for kx in range(3)]
    patches = jnp.concatenate(taps, axis=-1).reshape(NHW, K1)
    patches = jnp.pad(patches, ((0, 0), (0, K1p - K1)))                           # (NHW, K1p)

    # ---- zero-padded (Cout -> Cop) weights / BN params -------------------------------------
    # Padded channels stay exactly zero through conv -> BN(gamma=beta=0) -> ReLU -> conv2 ->
    # skip, and are never stored to the final output.
    w1p = jnp.zeros((K1p, Cop), jnp.float32).at[:K1, :Cout].set(w1.reshape(K1, Cout))
    w2p = jnp.zeros((3, 3, Cop, Cop), jnp.float32).at[:, :, :Cout, :Cout].set(w2)
    w2p = w2p.reshape(9, Cop, Cop)
    wsk_full = jnp.zeros((K1p, Cop), jnp.float32).at[4 * Cin:5 * Cin, :Cout].set(wsk)
    bskp = jnp.zeros((Cop,), jnp.float32).at[:Cout].set(bsk)[None, :]

    def padvec(v):
        return jnp.zeros((Cop,), jnp.float32).at[:Cout].set(v)

    g1p, be1p, g2p, be2p = padvec(g1), padvec(be1), padvec(g2), padvec(be2)

    grid = (N,)

    # ---- stage 1: conv1 + BN1 partial stats -------------------------------------------------
    h1_raw, part1 = pl.pallas_call(
        _conv1_kernel,
        grid=grid,
        in_specs=[pl.BlockSpec((HW, K1p), lambda n: (n, 0)),
                  pl.BlockSpec((K1p, Cop), lambda n: (0, 0))],
        out_specs=[pl.BlockSpec((HW, Cop), lambda n: (n, 0)),
                   pl.BlockSpec((1, 2, Cop), lambda n: (n, 0, 0))],
        out_shape=(jax.ShapeDtypeStruct((NHW, Cop), jnp.float32),
                   jax.ShapeDtypeStruct((N, 2, Cop), jnp.float32)),
        compiler_params=_compiler_params(
            [(HW, K1p), (K1p, Cop), (HW, Cop), (2, Cop)],
            extra_bytes=4 * _padded_bytes((HW, Cop))),
    )(patches, w1p)

    sc1, sh1 = _fold_bn(jnp.sum(part1, axis=0), g1p, be1p, NHW)

    # ---- stage 2: BN1 apply + ReLU + conv2 + BN2 partial stats ------------------------------
    h2_raw, part2 = pl.pallas_call(
        functools.partial(_conv2_kernel, H=H, W=W, Cop=Cop, d=d),
        grid=grid,
        in_specs=[pl.BlockSpec((HW, Cop), lambda n: (n, 0)),
                  pl.BlockSpec((1, Cop), lambda n: (0, 0)),
                  pl.BlockSpec((1, Cop), lambda n: (0, 0)),
                  pl.BlockSpec((9, Cop, Cop), lambda n: (0, 0, 0))],
        out_specs=[pl.BlockSpec((HW, Cop), lambda n: (n, 0)),
                   pl.BlockSpec((1, 2, Cop), lambda n: (n, 0, 0))],
        out_shape=(jax.ShapeDtypeStruct((NHW, Cop), jnp.float32),
                   jax.ShapeDtypeStruct((N, 2, Cop), jnp.float32)),
        scratch_shapes=[pltpu.VMEM((Hp, Wp, Cop), jnp.float32)],
        compiler_params=_compiler_params(
            [(HW, Cop), (1, Cop), (1, Cop), (9 * Cop, Cop), (HW, Cop), (2, Cop)],
            scratch_shapes=[(Hp, Wp, Cop)],
            extra_bytes=6 * _padded_bytes((HW, Cop))),
    )(h1_raw, sc1, sh1, w2p)

    sc2, sh2 = _fold_bn(jnp.sum(part2, axis=0), g2p, be2p, NHW)

    # ---- stage 3: BN2 apply + 1x1 skip + residual add + ReLU --------------------------------
    out_flat = pl.pallas_call(
        functools.partial(_finalize_kernel, Cout=Cout),
        grid=grid,
        in_specs=[pl.BlockSpec((HW, Cop), lambda n: (n, 0)),
                  pl.BlockSpec((HW, K1p), lambda n: (n, 0)),
                  pl.BlockSpec((K1p, Cop), lambda n: (0, 0)),
                  pl.BlockSpec((1, Cop), lambda n: (0, 0)),
                  pl.BlockSpec((1, Cop), lambda n: (0, 0)),
                  pl.BlockSpec((1, Cop), lambda n: (0, 0))],
        out_specs=pl.BlockSpec((HW, Cout), lambda n: (n, 0)),
        out_shape=jax.ShapeDtypeStruct((NHW, Cout), jnp.float32),
        compiler_params=_compiler_params(
            [(HW, Cop), (HW, K1p), (K1p, Cop), (1, Cop), (1, Cop), (1, Cop), (HW, Cout)],
            extra_bytes=4 * _padded_bytes((HW, Cop))),
    )(h2_raw, patches, wsk_full, bskp, sc2, sh2)

    out = out_flat.reshape(N, H, W, Cout)
    return jnp.transpose(out, (0, 3, 1, 2))                                      # back to NCHW


# --------------------------------- reference & test ---------------------------------------

def reference_block(x_nchw, params, dilation=1):
    """Pure-JAX reference of the PyTorch forward (training-mode BN, conv biases included)."""
    (w1, b1, g1, be1, w2, b2, g2, be2, wsk, bsk) = params
    Cin = w1.shape[2]
    Cout = w1.shape[3]
    d = dilation
    dn = ('NCHW', 'HWIO', 'NCHW')

    def conv(x, w, dil, pad):
        return lax.conv_general_dilated(x, w, (1, 1), [(pad, pad), (pad, pad)],
                                        rhs_dilation=(dil, dil), dimension_numbers=dn)

    def bn(v, g, b):
        mean = v.mean(axis=(0, 2, 3), keepdims=True)
        var = ((v - mean) ** 2).mean(axis=(0, 2, 3), keepdims=True)
        return ((v - mean) * lax.rsqrt(var + EPS) * g[None, :, None, None]
                + b[None, :, None, None])

    h = conv(x_nchw, w1, d, d) + b1[None, :, None, None]
    h = jnp.maximum(bn(h, g1, be1), 0.0)
    h = conv(h, w2, d, d) + b2[None, :, None, None]
    h = bn(h, g2, be2)
    if wsk is None:
        skip = x_nchw
    else:
        skip = conv(x_nchw, wsk.reshape(1, 1, Cin, Cout), 1, 0) + bsk[None, :, None, None]
    return jnp.maximum(h + skip, 0.0)


def make_params(key, in_ch, out_ch):
    ks = jax.random.split(key, 8)
    w1 = 0.1 * jax.random.normal(ks[0], (3, 3, in_ch, out_ch), jnp.float32)   # HWIO
    b1 = 0.1 * jax.random.normal(ks[1], (out_ch,), jnp.float32)
    g1 = 1.0 + 0.1 * jax.random.normal(ks[2], (out_ch,), jnp.float32)
    be1 = 0.1 * jax.random.normal(ks[3], (out_ch,), jnp.float32)
    w2 = 0.1 * jax.random.normal(ks[4], (3, 3, out_ch, out_ch), jnp.float32)
    b2 = 0.1 * jax.random.normal(ks[5], (out_ch,), jnp.float32)
    g2 = 1.0 + 0.1 * jax.random.normal(ks[6], (out_ch,), jnp.float32)
    be2 = 0.1 * jax.random.normal(ks[7], (out_ch,), jnp.float32)
    kw, kb = jax.random.split(jax.random.fold_in(key, 123))
    wsk = 0.1 * jax.random.normal(kw, (in_ch, out_ch), jnp.float32)           # 1x1 skip
    bsk = 0.1 * jax.random.normal(kb, (out_ch,), jnp.float32)
    return (w1, b1, g1, be1, w2, b2, g2, be2, wsk, bsk)


if __name__ == "__main__":
    key = jax.random.PRNGKey(0)
    kx, kp = jax.random.split(key)

    # Case 1: in_ch != out_ch (1x1 conv skip), dilation 1.
    N, Cin, Cout, H, W = 2, 4, 8, 16, 16
    x = jax.random.normal(kx, (N, Cin, H, W), jnp.float32)   # NCHW, like PyTorch
    params = make_params(kp, Cin, Cout)
    out = jax.block_until_ready(residual_block(x, params, 1))
    ref = jax.block_until_ready(reference_block(x, params, 1))
    assert out.shape == (N, Cout, H, W), out.shape
    assert jnp.allclose(out, ref, atol=1e-4, rtol=1e-4), \
        f"max abs err = {jnp.max(jnp.abs(out - ref))}"

    # Case 2: in_ch == out_ch (nn.Identity skip), dilation 2.
    k2x, k2p = jax.random.split(jax.random.fold_in(key, 7))
    x2 = jax.random.normal(k2x, (2, 8, 16, 16), jnp.float32)
    p2 = make_params(k2p, 8, 8)[:8] + (None, None)
    out2 = jax.block_until_ready(residual_block(x2, p2, 2))
    ref2 = jax.block_until_ready(reference_block(x2, p2, 2))
    assert jnp.allclose(out2, ref2, atol=1e-4, rtol=1e-4), \
        f"max abs err = {jnp.max(jnp.abs(out2 - ref2))}"

    print("KERNEL_OK")
</pallas_src>

<mosaic_0001>
module attributes {stable_mosaic.version = 11 : i64} {
  func.func @_conv1_kernel(%arg0: i32, %arg1: memref<256x128xf32, #tpu.memory_space<vmem>>, %arg2: memref<128x128xf32, #tpu.memory_space<vmem>>, %arg3: memref<256x128xf32, #tpu.memory_space<vmem>>, %arg4: memref<1x2x128xf32, #tpu.memory_space<vmem>>) attributes {dimension_semantics = [#tpu.dimension_semantics<parallel>], iteration_bounds = array<i64: 2>, scalar_prefetch = 0 : i64, scratch_operands = 0 : i64, tpu.core_type = #tpu.core_type<tc>, window_params = [{transform_indices = @transform_0, window_bounds = array<i64: 256, 128>}, {pipeline_mode = #tpu.pipeline_mode<synchronous>, transform_indices = @transform_1, window_bounds = array<i64: 128, 128>}, {transform_indices = @transform_2, window_bounds = array<i64: 256, 128>}, {transform_indices = @transform_3, window_bounds = array<i64: 1, 2, 128>}]} {
    %c0 = arith.constant 0 : index
    %c0_0 = arith.constant 0 : index
    %0 = vector.load %arg1[%c0, %c0_0] : memref<256x128xf32, #tpu.memory_space<vmem>>, vector<256x128xf32>
    %c0_1 = arith.constant 0 : index
    %c0_2 = arith.constant 0 : index
    %1 = vector.load %arg2[%c0_1, %c0_2] : memref<128x128xf32, #tpu.memory_space<vmem>>, vector<128x128xf32>
    %cst = arith.constant dense<0.000000e+00> : vector<256x128xf32>
    %2 = tpu.matmul %0, %1, %cst {dimension_numbers = #tpu.dot_dimension_numbers<[1], [0], [0], [1], [0, 0, 1, 1], [], []>} : vector<256x128xf32>, vector<128x128xf32>, vector<256x128xf32> -> vector<256x128xf32>
    %c0_3 = arith.constant 0 : index
    %c0_4 = arith.constant 0 : index
    %3 = vector.load %arg3[%c0_3, %c0_4] : memref<256x128xf32, #tpu.memory_space<vmem>>, vector<256x128xf32>
    tpu.vector_store %arg3[%c0_3, %c0_4], %2 {strides = array<i32>} : memref<256x128xf32, #tpu.memory_space<vmem>>, vector<256x128xf32>,
    %cst_5 = arith.constant dense<0.000000e+00> : vector<128xf32>
    %4 = vector.multi_reduction <add>, %2, %cst_5 [0] : vector<256x128xf32> to vector<128xf32>
    %5 = vector.shape_cast %4 : vector<128xf32> to vector<1x128xf32>
    %6 = arith.mulf %2, %2 : vector<256x128xf32>
    %cst_6 = arith.constant dense<0.000000e+00> : vector<128xf32>
    %7 = vector.multi_reduction <add>, %6, %cst_6 [0] : vector<256x128xf32> to vector<128xf32>
    %8 = vector.shape_cast %7 : vector<128xf32> to vector<1x128xf32>
    %9 = tpu.concatenate %5, %8 in 0 : vector<1x128xf32>, vector<1x128xf32> -> vector<2x128xf32>
    %10 = vector.shape_cast %9 : vector<2x128xf32> to vector<1x2x128xf32>
    %c0_7 = arith.constant 0 : index
    %c0_8 = arith.constant 0 : index
    %c0_9 = arith.constant 0 : index
    %11 = vector.load %arg4[%c0_7, %c0_8, %c0_9] : memref<1x2x128xf32, #tpu.memory_space<vmem>>, vector<1x2x128xf32>
    tpu.vector_store %arg4[%c0_7, %c0_8, %c0_9], %10 {strides = array<i32>} : memref<1x2x128xf32, #tpu.memory_space<vmem>>, vector<1x2x128xf32>,
    return
  }
  func.func @transform_0(%arg0: i32) -> (i32, i32) {
    %c0_i32 = arith.constant 0 : i32
    %c0_i32_0 = arith.constant 0 : i32
    return %arg0, %c0_i32 : i32, i32
  }
  func.func @transform_1(%arg0: i32) -> (i32, i32) {
    %c0_i32 = arith.constant 0 : i32
    %c0_i32_0 = arith.constant 0 : i32
    %c0_i32_1 = arith.constant 0 : i32
    return %c0_i32, %c0_i32_0 : i32, i32
  }
  func.func @transform_2(%arg0: i32) -> (i32, i32) {
    %c0_i32 = arith.constant 0 : i32
    %c0_i32_0 = arith.constant 0 : i32
    return %arg0, %c0_i32 : i32, i32
  }
  func.func @transform_3(%arg0: i32) -> (i32, i32, i32) {
    %c0_i32 = arith.constant 0 : i32
    %c0_i32_0 = arith.constant 0 : i32
    %c0_i32_1 = arith.constant 0 : i32
    return %arg0, %c0_i32, %c0_i32_0 : i32, i32, i32
  }
}

</mosaic_0001>

<bundles_post_ra>
// kernel: tpu_custom_call.1
= control target key start
LH: loop header
LB: loop body
LE: loop exit
PB: predicated region body
PF: predicated region fallthrough
CT: control target
= control target key end

     0   :  { %9 = vsyncpa [#allocation3], 0  ;;  %s1357_s0 = inlined_call_operand.hbm [shape: f32[512,128], index: 0, kind: input, shape index: {}]   ;;  %s1358_s1 = inlined_call_operand.hbm [shape: f32[128,128], index: 1, kind: input, shape index: {}]   ;;  %s1359_s2 = inlined_call_operand.hbm [shape: f32[512,128], index: 2, kind: output, shape index: {0}]   ;;  %s1360_s3 = inlined_call_operand.hbm [shape: f32[2,2,128], index: 3, kind: output, shape index: {1}]  }
   0x1   :  { %11 = vsyncpa [#allocation3 + $0x1], 0 }
   0x2   :  { %12 = vsyncpa [#allocation6], 0 }
   0x3   :  { %13 = vsyncpa [#allocation4], 0 }
   0x4   :  { %15 = vsyncpa [#allocation4 + $0x1], 0 }
   0x5   :  { %16 = vsyncpa [#allocation9], 0 }
   0x6   :  { %18 = vsyncpa [#allocation9 + $0x1], 0  ;;  %s998_s12 = smov 0   ;;  %s1000_s13 = smov 0  }
   0x7   :  { %s1002_s14 = smov 0   ;;  %s1004_s15 = smov 0  }
   0x8 LB: > { %s1019_s16 = sadd.s32 4294967295, %s971_s15   ;;  %s674_s17 = sadd.s32 4294967294, %s971_s15   ;;  %s971_s15 = sphi %s1004_s15, %s1370_s15   ;;  %s967_s14 = sphi %s1002_s14, %s1369_s14   ;;  %s963_s13 = sphi %s1000_s13, %s1368_s13   ;;  %s959_s12 = sphi %s998_s12, %s1367_s12  }
   0x9   : > { %p44_p0 = scmp.ne.s32.totalorder %s963_s13, %s959_s12  ;;  %p45_p1 = scmp.eq.s32.totalorder %s1019_s16, 0 }
   0xa   : > { %p89_p2 = scmp.eq.s32.totalorder %s1019_s16, 1  ;;  %p95_p3 = scmp.eq.s32.totalorder %s674_s17, 1 }
   0xb   : > { %p1028_p4 = por %p45_p1, %p44_p0  ;;  %p675_p5 = scmp.ge.s32.totalorder %s971_s15, 1 }
   0xc   : > { %p1033_p6 = por %p95_p3, %p44_p0  ;;  %p128_p7 = scmp.lt.s32.totalorder %s971_s15, 3 }
   0xd   : > { %s139_s22 = sshll.u32 %s1358_s1, 4  ;;  %s973_s24 = smov [#allocation5]   ;;  %s140_s22 = int_to_ptr.hbm [resolvable:$true] %s139_s22 }
   0xe   : > { %p1041_p8 = pnand %p675_p5, %p128_p7  ;;  %s141_s25 = sshll.u32 %s973_s24, 4  ;;  %s142_s25 = int_to_ptr.vmem [resolvable:$true] %s141_s25 }
   0xf   : > { %s1051_s26 = sadd.s32 1, %s971_s15   ;;  %s974_s27 = smov 128  }
  0x10   : > { %p753_p9 = pneg %p1041_p8  ;;  %s975_s28 = smov 8  }
  0x11   : > { %s28_s29 = ssub.s32 %s971_s15, %s1051_s26  ;;  %s31_s30 = sadd.s32 1, %s967_s14 }
  0x12   : > { %p754_p10 = pnand %p753_p9, %p45_p1  ;;  %p29_p12 = scmp.eq.s32.totalorder %s28_s29, 0 }
  0x13   : > { %p38_p13 = scmp.ne.s32.totalorder %s967_s14, %s963_s13  ;;  %p39_p0 = scmp.eq.s32.totalorder %s971_s15, 0 }
  0x14   : > { %756 = dma.hbm_to_vmem [thread:$0]  (!%p754_p10), %s140_s22, 2048, %s142_s25, [#allocation6], %s974_s27, %s974_s27, %s975_s28  }
  0x15   : > { %s1063_s4 = scalar_select %p29_p12, %s967_s14, %s31_s30  }
  0x16   : > { %p1067_p3 = por %p89_p2, %p38_p13  ;;  %p769_p5 = scmp.lt.s32.totalorder %s971_s15, 2 }
  0x17   : > { %s155_s6 = sand.u32 1, %s967_s14   ;;  %s693_s7 = sshll.u32 %s971_s15, 8 }
  0x18   : > { %p40_p7 = por %p39_p0, %p38_p13  ;;  %s678_s8 = sshll.u32 %s155_s6, 8 }
  0x19   : > { %s164_s11 = scalar_lea.hbm %s1357_s0, %s693_s7  ;;  %s159_s20 = scalar_lea.vmem [#allocation2], %s678_s8 }
  0x1a   : > { %s165_s17 = sshll.u32 %s164_s11, 4  ;;  %s167_s21 = sshll.u32 %s159_s20, 4  ;;  %s166_s17 = int_to_ptr.hbm [resolvable:$true] %s165_s17  ;;  %s168_s21 = int_to_ptr.vmem [resolvable:$true] %s167_s21 }
  0x1b   : > { %p1077_p9 = pnand %p769_p5, %p40_p7  ;;  %s156_s24 = scalar_lea.sflag [#allocation3], %s155_s6 }
  0x1c   : > { %s839_s25 = sshra.s32 %s166_s17, 4  ;;  %s846_s8 = scalar_lea.hbm %s1357_s0, 512  ;;  %s840_s25 = int_to_ptr.hbm [resolvable:$true] %s839_s25 }
  0x1d   : > { %s841_s29 = scalar_lea.hbm %s840_s25, 256  ;;  %p843_p10 = pneg %p1077_p9 }
  0x1e   : > { %p842_p2 = scmp.ne.s32.totalorder %s840_s25, %s841_s29  ;;  %p847_p0 = scmp.lt.s32.totalorder %s840_s25, %s1357_s0 }
  0x1f   : > { %p848_p5 = scmp.lt.s32.totalorder %s846_s8, %s841_s29 }
  0x20   : > { %p844_p12 = pnand %p843_p10, %p842_p2 }
  0x21   : > { %p849_p7 = por %p848_p5, %p847_p0 }
  0x22   : > { %p845_p13 = pneg %p844_p12 }
  0x24   : > { %p850_p11 = pnand %p849_p7, %p845_p13 }
  0x26   : > { %853 = shalt.err (!%p850_p11)
}
  0x27   : > { %760 = dma.hbm_to_vmem [thread:$0]  (!%p1077_p9), %s166_s17, 4096, %s168_s21, %s156_s24, %s974_s27, %s974_s27, %s975_s28  }
  0x28   : > { %179 = sbr.rel (%p1041_p8) target bundleno = 330 (0x14a), region = 28  ;;  %s1097_s6 = sand.u32 (!%p1041_p8), 1, %s963_s13  }
  0x29   : > { %s682_s11 = sshll.u32 (!%p1041_p8), %s1097_s6, 8  ;;  %s182_s20 = scalar_lea.sflag (!%p1041_p8), [#allocation3], %s1097_s6 }
  0x2a   : > { %s1103_s25 = scalar_lea.vmem (!%p1041_p8), [#allocation2], %s682_s11 }
  0x2d   : > { %942 = dma.done.wait (%p1028_p4), %s182_s20, 4096  }
  0x2e   : > { %944 = vsyncadd (%p1028_p4), %s182_s20, 4294963200 }
  0x2f   : > { %946 = dma.done.wait (%p45_p1), [#allocation6], 2048  }
  0x30   : > { %948 = vsyncadd (%p45_p1), [#allocation6], 4294965248  ;;  %v268_v0 = vld [vmem:[#allocation5 + $0x78] sm:$0xff]  ;;  %v267_v1 = vld [vmem:[#allocation5 + $0x70] sm:$0xff]  ;;  %s1149_s18 = scalar_lea.vmem [#allocation7], %s682_s11  ;;  %s694_s23 = sshll.u32 %s1019_s16, 8 }
  0x31   : > { %269 = vmatpush.msra.mxu0 %v268_v0  ;;  %695 = vmatpush.msra.mxu1 %v268_v0  ;;  %v266_v2 = vld [vmem:[#allocation5 + $0x68] sm:$0xff]  ;;  %v265_v3 = vld [vmem:[#allocation5 + $0x60] sm:$0xff]  ;;  %v264_v4 = vld [vmem:[#allocation5 + $0x58] sm:$0xff]  ;;  %s540_s17 = scalar_lea.hbm %s1359_s2, %s694_s23  ;;  %s541_s21 = sshll.u32 %s1149_s18, 4  ;;  %s542_s21 = int_to_ptr.vmem [resolvable:$true] %s541_s21 }
  0x32   : > { %696 = vmatpush.msra.mxu2 %v268_v0  ;;  %697 = vmatpush.msra.mxu3 %v268_v0  ;;  %v263_v5 = vld [vmem:[#allocation5 + $0x50] sm:$0xff]  ;;  %v262_v6 = vld [vmem:[#allocation5 + $0x48] sm:$0xff]  ;;  %v261_v7 = vld [vmem:[#allocation5 + $0x40] sm:$0xff]  ;;  %s543_s22 = sshll.u32 %s540_s17, 4  ;;  %s524_s24 = scalar_lea.sflag [#allocation4], %s1097_s6  ;;  %s544_s22 = int_to_ptr.hbm [resolvable:$true] %s543_s22 }
  0x33   : > { %270 = vmatpush.msra.mxu0 %v267_v1  ;;  %698 = vmatpush.msra.mxu1 %v267_v1  ;;  %v260_v8 = vld [vmem:[#allocation5 + $0x38] sm:$0xff]  ;;  %v259_v9 = vld [vmem:[#allocation5 + $0x30] sm:$0xff]  ;;  %v258_v10 = vld [vmem:[#allocation5 + $0x28] sm:$0xff]  ;;  %s883_s29 = sshra.s32 %s544_s22, 4  ;;  %s889_s9 = scalar_lea.hbm %s1359_s2, 512  ;;  %s884_s29 = int_to_ptr.hbm [resolvable:$true] %s883_s29 }
  0x34   : > { %699 = vmatpush.msra.mxu2 %v267_v1  ;;  %700 = vmatpush.msra.mxu3 %v267_v1  ;;  %v257_v11 = vld [vmem:[#allocation5 + $0x20] sm:$0xff]  ;;  %v256_v12 = vld [vmem:[#allocation5 + $0x18] sm:$0xff]  ;;  %v255_v13 = vld [vmem:[#allocation5 + $0x10] sm:$0xff]  ;;  %s885_s30 = scalar_lea.hbm %s884_s29, 256  ;;  %p890_p11 = scmp.lt.s32.totalorder %s884_s29, %s1359_s2 }
  0x35   : > { %271 = vmatpush.msra.mxu0 %v266_v2  ;;  %701 = vmatpush.msra.mxu1 %v266_v2  ;;  %v254_v14 = vld [vmem:[#allocation5 + $0x8] sm:$0xff]  ;;  %v253_v15 = vld [vmem:[#allocation5] sm:$0xff]  ;;  %v223_v23 = vld [vmem:[%s1103_s25 + $0x10] sm:$0xff]  ;;  %p886_p1 = scmp.ne.s32.totalorder %s884_s29, %s885_s30  ;;  %p891_p9 = scmp.lt.s32.totalorder %s889_s9, %s885_s30 }
  0x36   : > { %702 = vmatpush.msra.mxu2 %v266_v2  ;;  %703 = vmatpush.msra.mxu3 %v266_v2  ;;  %v221_v16 = vld [vmem:[%s1103_s25] sm:$0xff]  ;;  %v222_v19 = vld [vmem:[%s1103_s25 + $0x8] sm:$0xff]  ;;  %v231_v24 = vld [vmem:[%s1103_s25 + $0x50] sm:$0xff] }
  0x37   : > { %272 = vmatpush.msra.mxu0 %v265_v3  ;;  %704 = vmatpush.msra.mxu1 %v265_v3  ;;  %v229_v17 = vld [vmem:[%s1103_s25 + $0x40] sm:$0xff]  ;;  %v230_v20 = vld [vmem:[%s1103_s25 + $0x48] sm:$0xff]  ;;  %v239_v25 = vld [vmem:[%s1103_s25 + $0x90] sm:$0xff]  ;;  %p887_p4 = pnand %p886_p1, %p1067_p3  ;;  %p892_p2 = por %p891_p9, %p890_p11 }
  0x38   : > { %705 = vmatpush.msra.mxu2 %v265_v3  ;;  %706 = vmatpush.msra.mxu3 %v265_v3  ;;  %v237_v18 = vld [vmem:[%s1103_s25 + $0x80] sm:$0xff]  ;;  %v238_v21 = vld [vmem:[%s1103_s25 + $0x88] sm:$0xff]  ;;  %v224_v27 = vld [vmem:[%s1103_s25 + $0x18] sm:$0xff] }
  0x39   : > { %273 = vmatpush.msra.mxu0 %v264_v4  ;;  %707 = vmatpush.msra.mxu1 %v264_v4  ;;  %v245_v22 = vld [vmem:[%s1103_s25 + $0xc0] sm:$0xff]  ;;  %v246_v26 = vld [vmem:[%s1103_s25 + $0xc8] sm:$0xff]  ;;  %v232_v28 = vld [vmem:[%s1103_s25 + $0x58] sm:$0xff]  ;;  %p888_p8 = pneg %p887_p4 }
  0x3a   : > { %708 = vmatpush.msra.mxu2 %v264_v4  ;;  %709 = vmatpush.msra.mxu3 %v264_v4  ;;  %v240_v29 = vld [vmem:[%s1103_s25 + $0x98] sm:$0xff]  ;;  %v247_v30 = vld [vmem:[%s1103_s25 + $0xd0] sm:$0xff]  ;;  %v225_v31 = vld [vmem:[%s1103_s25 + $0x20] sm:$0xff] }
  0x3b   : > { %274 = vmatpush.msra.mxu0 %v263_v5  ;;  %710 = vmatpush.msra.mxu1 %v263_v5  ;;  %v233_v32 = vld [vmem:[%s1103_s25 + $0x60] sm:$0xff]  ;;  %v248_v33 = vld [vmem:[%s1103_s25 + $0xd8] sm:$0xff]  ;;  %v226_v35 = vld [vmem:[%s1103_s25 + $0x28] sm:$0xff]  ;;  %p893_p10 = pnand %p892_p2, %p888_p8 }
  0x3c   : > { %711 = vmatpush.msra.mxu2 %v263_v5  ;;  %712 = vmatpush.msra.mxu3 %v263_v5  ;;  %v241_v34 = vld [vmem:[%s1103_s25 + $0xa0] sm:$0xff]  ;;  %v234_v36 = vld [vmem:[%s1103_s25 + $0x68] sm:$0xff]  ;;  %v227_v39 = vld [vmem:[%s1103_s25 + $0x30] sm:$0xff] }
  0x3d   : > { %275 = vmatpush.msra.mxu0 %v262_v6  ;;  %713 = vmatpush.msra.mxu1 %v262_v6  ;;  %v249_v37 = vld [vmem:[%s1103_s25 + $0xe0] sm:$0xff]  ;;  %v242_v38 = vld [vmem:[%s1103_s25 + $0xa8] sm:$0xff]  ;;  %v235_v40 = vld [vmem:[%s1103_s25 + $0x70] sm:$0xff] }
  0x3e   : > { %714 = vmatpush.msra.mxu2 %v262_v6  ;;  %715 = vmatpush.msra.mxu3 %v262_v6  ;;  %v250_v41 = vld [vmem:[%s1103_s25 + $0xe8] sm:$0xff]  ;;  %v243_v42 = vld [vmem:[%s1103_s25 + $0xb0] sm:$0xff]  ;;  %v228_v43 = vld [vmem:[%s1103_s25 + $0x38] sm:$0xff] }
  0x3f   : > { %276 = vmatpush.msra.mxu0 %v261_v7  ;;  %716 = vmatpush.msra.mxu1 %v261_v7  ;;  %v236_v44 = vld [vmem:[%s1103_s25 + $0x78] sm:$0xff]  ;;  %v251_v45 = vld [vmem:[%s1103_s25 + $0xf0] sm:$0xff] }
  0x40   : > { %717 = vmatpush.msra.mxu2 %v261_v7  ;;  %718 = vmatpush.msra.mxu3 %v261_v7  ;;  %v244_v46 = vld [vmem:[%s1103_s25 + $0xb8] sm:$0xff] }
  0x41   : > { %277 = vmatpush.msra.mxu0 %v260_v8  ;;  %719 = vmatpush.msra.mxu1 %v260_v8  ;;  %v252_v47 = vld [vmem:[%s1103_s25 + $0xf8] sm:$0xff] }
  0x42   : > { %720 = vmatpush.msra.mxu2 %v260_v8  ;;  %721 = vmatpush.msra.mxu3 %v260_v8 }
  0x43   : > { %278 = vmatpush.msra.mxu0 %v259_v9  ;;  %722 = vmatpush.msra.mxu1 %v259_v9 }
  0x44   : > { %723 = vmatpush.msra.mxu2 %v259_v9  ;;  %724 = vmatpush.msra.mxu3 %v259_v9 }
  0x45   : > { %279 = vmatpush.msra.mxu0 %v258_v10  ;;  %725 = vmatpush.msra.mxu1 %v258_v10 }
  0x46   : > { %726 = vmatpush.msra.mxu2 %v258_v10  ;;  %727 = vmatpush.msra.mxu3 %v258_v10 }
  0x47   : > { %280 = vmatpush.msra.mxu0 %v257_v11  ;;  %728 = vmatpush.msra.mxu1 %v257_v11 }
  0x48   : > { %729 = vmatpush.msra.mxu2 %v257_v11  ;;  %730 = vmatpush.msra.mxu3 %v257_v11 }
  0x49   : > { %281 = vmatpush.msra.mxu0 %v256_v12  ;;  %731 = vmatpush.msra.mxu1 %v256_v12 }
  0x4a   : > { %732 = vmatpush.msra.mxu2 %v256_v12  ;;  %733 = vmatpush.msra.mxu3 %v256_v12 }
  0x4b   : > { %282 = vmatpush.msra.mxu0 %v255_v13  ;;  %734 = vmatpush.msra.mxu1 %v255_v13 }
  0x4c   : > { %735 = vmatpush.msra.mxu2 %v255_v13  ;;  %736 = vmatpush.msra.mxu3 %v255_v13 }
  0x4d   : > { %283 = vmatpush.msra.mxu0 %v254_v14  ;;  %737 = vmatpush.msra.mxu1 %v254_v14 }
  0x4e   : > { %738 = vmatpush.msra.mxu2 %v254_v14  ;;  %739 = vmatpush.msra.mxu3 %v254_v14 }
  0x4f   : > { %284 = vmatpush.msra.mxu0 %v253_v15  ;;  %740 = vmatpush.msra.mxu1 %v253_v15 }
  0x50   : > { %285 = vmatmul.f32.vlgmr.msra.gmra.mxu0 %v221_v16  ;;  %309 = vmatmul.f32.vlgmr.msra.gmra.mxu1 %v229_v17 }
  0x51   : > { %741 = vmatpush.msra.mxu2 %v253_v15  ;;  %742 = vmatpush.msra.mxu3 %v253_v15 }
  0x52   : > { %333 = vmatmul.f32.vlgmr.msra.gmra.mxu2 %v237_v18  ;;  %357 = vmatmul.f32.vlgmr.msra.gmra.mxu3 %v245_v22 }
  0x58   : > { %288 = vmatmul.f32.gmra.mxu0 %v222_v19  ;;  %312 = vmatmul.f32.gmra.mxu1 %v230_v20 }
  0x5a   : > { %336 = vmatmul.f32.gmra.mxu2 %v238_v21  ;;  %360 = vmatmul.f32.gmra.mxu3 %v246_v26 }
  0x60   : > { %291 = vmatmul.f32.gmra.mxu0 %v223_v23  ;;  %315 = vmatmul.f32.gmra.mxu1 %v231_v24 }
  0x62   : > { %339 = vmatmul.f32.gmra.mxu2 %v239_v25  ;;  %363 = vmatmul.f32.gmra.mxu3 %v247_v30 }
  0x68   : > { %294 = vmatmul.f32.gmra.mxu0 %v224_v27  ;;  %318 = vmatmul.f32.gmra.mxu1 %v232_v28 }
  0x6a   : > { %342 = vmatmul.f32.gmra.mxu2 %v240_v29  ;;  %366 = vmatmul.f32.gmra.mxu3 %v248_v33 }
  0x70   : > { %297 = vmatmul.f32.gmra.mxu0 %v225_v31  ;;  %321 = vmatmul.f32.gmra.mxu1 %v233_v32 }
  0x72   : > { %345 = vmatmul.f32.gmra.mxu2 %v241_v34  ;;  %369 = vmatmul.f32.gmra.mxu3 %v249_v37 }
  0x78   : > { %300 = vmatmul.f32.gmra.mxu0 %v226_v35  ;;  %324 = vmatmul.f32.gmra.mxu1 %v234_v36 }
  0x7a   : > { %348 = vmatmul.f32.gmra.mxu2 %v242_v38  ;;  %372 = vmatmul.f32.gmra.mxu3 %v250_v41 }
  0x80   : > { %303 = vmatmul.f32.gmra.mxu0 %v227_v39  ;;  %327 = vmatmul.f32.gmra.mxu1 %v235_v40 }
  0x82   : > { %351 = vmatmul.f32.gmra.mxu2 %v243_v42  ;;  %375 = vmatmul.f32.gmra.mxu3 %v251_v45 }
  0x88   : > { %306 = vmatmul.f32.gmra.mxu0 %v228_v43  ;;  %330 = vmatmul.f32.gmra.mxu1 %v236_v44 }
  0x8a   : > { %354 = vmatmul.f32.gmra.mxu2 %v244_v46  ;;  %378 = vmatmul.f32.gmra.mxu3 %v252_v47 }
  0xcd   : > { %v286_v48 = vpop.f32.mrf.mxu0  ;;  %v1145_v49 = vpop.f32.mrf.mxu1 }
  0xce   : > { %382 = vst [vmem:[%s1149_s18] sm:$0xff] %v286_v48  ;;  %v451_v6 = vmul.f32 %v286_v48, %v286_v48  ;;  %v459_v34 = vmul.f32 %v1145_v49, %v1145_v49 }
  0xcf   : > { %390 = vst [vmem:[%s1149_s18 + $0x40] sm:$0xff] %v1145_v49 }
  0xd5   : > { %v289_v50 = vpop.f32.mrf.mxu0  ;;  %v1154_v51 = vpop.f32.mrf.mxu1 }
  0xd6   : > { %383 = vst [vmem:[%s1149_s18 + $0x8] sm:$0xff] %v289_v50  ;;  %v1157_v52 = vpop.f32.mrf.mxu2  ;;  %v1168_v56 = vpop.f32.mrf.mxu3  ;;  %v452_v5 = vmul.f32 %v289_v50, %v289_v50  ;;  %v414_v7 = vadd.f32 %v289_v50, %v286_v48  ;;  %v460_v37 = vmul.f32 %v1154_v51, %v1154_v51 }
  0xd7   : > { %391 = vst [vmem:[%s1149_s18 + $0x48] sm:$0xff] %v1154_v51 }
  0xd8   : > { %398 = vst [vmem:[%s1149_s18 + $0x80] sm:$0xff] %v1157_v52  ;;  %v483_v9 = vadd.f32 %v452_v5, %v451_v6 }
  0xd9   : > { %406 = vst [vmem:[%s1149_s18 + $0xc0] sm:$0xff] %v1168_v56 }
  0xdd   : > { %v292_v53 = vpop.f32.mrf.mxu0  ;;  %v1163_v54 = vpop.f32.mrf.mxu1 }
  0xde   : > { %384 = vst [vmem:[%s1149_s18 + $0x10] sm:$0xff] %v292_v53  ;;  %v1166_v55 = vpop.f32.mrf.mxu2  ;;  %v1181_v60 = vpop.f32.mrf.mxu3  ;;  %v453_v8 = vmul.f32 %v292_v53, %v292_v53  ;;  %v415_v10 = vadd.f32 %v414_v7, %v292_v53  ;;  %v461_v40 = vmul.f32 %v1163_v54, %v1163_v54  ;;  %v467_v7 = vmul.f32 %v1157_v52, %v1157_v52 }
  0xdf   : > { %392 = vst [vmem:[%s1149_s18 + $0x50] sm:$0xff] %v1163_v54 }
  0xe0   : > { %399 = vst [vmem:[%s1149_s18 + $0x88] sm:$0xff] %v1166_v55  ;;  %v484_v14 = vadd.f32 %v483_v9, %v453_v8 }
  0xe1   : > { %407 = vst [vmem:[%s1149_s18 + $0xc8] sm:$0xff] %v1181_v60 }
  0xe5   : > { %v295_v57 = vpop.f32.mrf.mxu0  ;;  %v1176_v58 = vpop.f32.mrf.mxu1 }
  0xe6   : > { %385 = vst [vmem:[%s1149_s18 + $0x18] sm:$0xff] %v295_v57  ;;  %v1179_v59 = vpop.f32.mrf.mxu2  ;;  %v1194_v0 = vpop.f32.mrf.mxu3  ;;  %v454_v11 = vmul.f32 %v295_v57, %v295_v57  ;;  %v416_v15 = vadd.f32 %v415_v10, %v295_v57  ;;  %v462_v43 = vmul.f32 %v1176_v58, %v1176_v58 }
  0xe7   : > { %393 = vst [vmem:[%s1149_s18 + $0x58] sm:$0xff] %v1176_v58 }
  0xe8   : > { %400 = vst [vmem:[%s1149_s18 + $0x90] sm:$0xff] %v1179_v59  ;;  %v485_v19 = vadd.f32 %v484_v14, %v454_v11 }
  0xe9   : > { %408 = vst [vmem:[%s1149_s18 + $0xd0] sm:$0xff] %v1194_v0 }
  0xed   : > { %v298_v61 = vpop.f32.mrf.mxu0  ;;  %v1189_v62 = vpop.f32.mrf.mxu1 }
  0xee   : > { %386 = vst [vmem:[%s1149_s18 + $0x20] sm:$0xff] %v298_v61  ;;  %v1192_v63 = vpop.f32.mrf.mxu2  ;;  %v1207_v4 = vpop.f32.mrf.mxu3  ;;  %v455_v16 = vmul.f32 %v298_v61, %v298_v61  ;;  %v417_v20 = vadd.f32 %v416_v15, %v298_v61  ;;  %v463_v48 = vmul.f32 %v1189_v62, %v1189_v62 }
  0xef   : > { %394 = vst [vmem:[%s1149_s18 + $0x60] sm:$0xff] %v1189_v62 }
  0xf0   : > { %401 = vst [vmem:[%s1149_s18 + $0x98] sm:$0xff] %v1192_v63  ;;  %v486_v22 = vadd.f32 %v485_v19, %v455_v16 }
  0xf1   : > { %409 = vst [vmem:[%s1149_s18 + $0xd8] sm:$0xff] %v1207_v4 }
  0xf5   : > { %v301_v1 = vpop.f32.mrf.mxu0  ;;  %v1202_v2 = vpop.f32.mrf.mxu1 }
  0xf6   : > { %387 = vst [vmem:[%s1149_s18 + $0x28] sm:$0xff] %v301_v1  ;;  %v1205_v3 = vpop.f32.mrf.mxu2  ;;  %v1218_v18 = vpop.f32.mrf.mxu3  ;;  %v456_v21 = vmul.f32 %v301_v1, %v301_v1  ;;  %v418_v23 = vadd.f32 %v417_v20, %v301_v1  ;;  %v464_v53 = vmul.f32 %v1202_v2, %v1202_v2 }
  0xf7   : > { %395 = vst [vmem:[%s1149_s18 + $0x68] sm:$0xff] %v1202_v2 }
  0xf8   : > { %402 = vst [vmem:[%s1149_s18 + $0xa0] sm:$0xff] %v1205_v3  ;;  %v487_v25 = vadd.f32 %v486_v22, %v456_v21 }
  0xf9   : > { %410 = vst [vmem:[%s1149_s18 + $0xe0] sm:$0xff] %v1218_v18 }
  0xfd   : > { %v304_v12 = vpop.f32.mrf.mxu0  ;;  %v328_v13 = vpop.f32.mrf.mxu1 }
  0xfe   : > { %388 = vst [vmem:[%s1149_s18 + $0x30] sm:$0xff] %v304_v12  ;;  %v1216_v17 = vpop.f32.mrf.mxu2  ;;  %v457_v24 = vmul.f32 %v304_v12, %v304_v12  ;;  %v419_v26 = vadd.f32 %v418_v23, %v304_v12  ;;  %v1228_v33 = vpop.f32.mrf.mxu3  ;;  %v465_v61 = vmul.f32 %v328_v13, %v328_v13 }
  0xff   : > { %396 = vst [vmem:[%s1149_s18 + $0x70] sm:$0xff] %v328_v13 }
 0x100   : > { %403 = vst [vmem:[%s1149_s18 + $0xa8] sm:$0xff] %v1216_v17  ;;  %v488_v29 = vadd.f32 %v487_v25, %v457_v24 }
 0x101   : > { %411 = vst [vmem:[%s1149_s18 + $0xe8] sm:$0xff] %v1228_v33 }
 0x105   : > { %v307_v27 = vpop.f32.mrf.mxu0  ;;  %v331_v28 = vpop.f32.mrf.mxu1 }
 0x106   : > { %389 = vst [vmem:[%s1149_s18 + $0x38] sm:$0xff] %v307_v27  ;;  %v420_v30 = vadd.f32 %v419_v26, %v307_v27  ;;  %v458_v31 = vmul.f32 %v307_v27, %v307_v27  ;;  %v1226_v32 = vpop.f32.mrf.mxu2  ;;  %v1248_v47 = vpop.f32.mrf.mxu3  ;;  %v466_v1 = vmul.f32 %v331_v28, %v331_v28 }
 0x107   : > { %397 = vst [vmem:[%s1149_s18 + $0x78] sm:$0xff] %v331_v28 }
 0x108   : > { %v421_v35 = vadd.f32 %v420_v30, %v1145_v49  ;;  %v489_v36 = vadd.f32 %v488_v29, %v458_v31  ;;  %404 = vst [vmem:[%s1149_s18 + $0xb0] sm:$0xff] %v1226_v32 }
 0x109   : > { %412 = vst [vmem:[%s1149_s18 + $0xf0] sm:$0xff] %v1248_v47 }
 0x10a   : > { %v422_v38 = vadd.f32 %v421_v35, %v1154_v51  ;;  %v490_v39 = vadd.f32 %v489_v36, %v459_v34 }
 0x10c   : > { %v423_v41 = vadd.f32 %v422_v38, %v1163_v54  ;;  %v491_v42 = vadd.f32 %v490_v39, %v460_v37 }
 0x10e   : > { %v492_v44 = vadd.f32 %v491_v42, %v461_v40  ;;  %v424_v45 = vadd.f32 %v423_v41, %v1176_v58  ;;  %v355_v46 = vpop.f32.mrf.mxu2  ;;  %v1263_v6 = vpop.f32.mrf.mxu3 }
 0x10f   : > { %405 = vst [vmem:[%s1149_s18 + $0xb8] sm:$0xff] %v355_v46 }
 0x110   : > { %v425_v49 = vadd.f32 %v424_v45, %v1189_v62  ;;  %v493_v50 = vadd.f32 %v492_v44, %v462_v43  ;;  %413 = vst [vmem:[%s1149_s18 + $0xf8] sm:$0xff] %v1263_v6 }
 0x112   : > { %v426_v51 = vadd.f32 %v425_v49, %v1202_v2  ;;  %v494_v54 = vadd.f32 %v493_v50, %v463_v48 }
 0x114   : > { %v495_v57 = vadd.f32 %v494_v54, %v464_v53  ;;  %v427_v58 = vadd.f32 %v426_v51, %v328_v13 }
 0x116   : > { %v496_v62 = vadd.f32 %v495_v57, %v465_v61  ;;  %v428_v5 = vadd.f32 %v427_v58, %v331_v28 }
 0x118   : > { %v429_v8 = vadd.f32 %v428_v5, %v1157_v52  ;;  %v497_v2 = vadd.f32 %v496_v62, %v466_v1 }
 0x119   : > { %896 = shalt.err (!%p893_p10)
}
 0x11a   : > { %s976_s20 = smov 128   ;;  %s977_s25 = smov 8   ;;  %v468_v52 = vmul.f32 %v1166_v55, %v1166_v55  ;;  %v430_v9 = vadd.f32 %v429_v8, %v1166_v55  ;;  %v498_v10 = vadd.f32 %v497_v2, %v467_v7  ;;  %v469_v11 = vmul.f32 %v1179_v59, %v1179_v59 }
 0x11b   : > { %749 = dma.vmem_to_hbm [thread:$0]  (%p1067_p3), %s542_s21, 4096, %s544_s22, %s524_s24, %s976_s20, %s976_s20, %s977_s25   ;;  %v470_v14 = vmul.f32 %v1192_v63, %v1192_v63  ;;  %v471_v19 = vmul.f32 %v1205_v3, %v1205_v3  ;;  %v472_v22 = vmul.f32 %v1216_v17, %v1216_v17  ;;  %v473_v25 = vmul.f32 %v1226_v32, %v1226_v32 }
 0x11c   : > { %v431_v12 = vadd.f32 %v430_v9, %v1179_v59  ;;  %v499_v13 = vadd.f32 %v498_v10, %v468_v52  ;;  %v474_v26 = vmul.f32 %v355_v46, %v355_v46  ;;  %v475_v28 = vmul.f32 %v1168_v56, %v1168_v56  ;;  %s685_s18 = sshll.u32 %s1097_s6, 1  ;;  %s690_s23 = sshll.u32 %s1019_s16, 1 }
 0x11d   : > { %v476_v30 = vmul.f32 %v1181_v60, %v1181_v60  ;;  %v477_v34 = vmul.f32 %v1194_v0, %v1194_v0  ;;  %v478_v36 = vmul.f32 %v1207_v4, %v1207_v4  ;;  %v482_v44 = vmul.f32 %v1263_v6, %v1263_v6  ;;  %s556_s17 = scalar_lea.hbm %s1360_s3, %s690_s23  ;;  %s218_s21 = scalar_lea.vmem [#allocation8], %s685_s18 }
 0x11e   : > { %v500_v15 = vadd.f32 %v499_v13, %v469_v11  ;;  %v432_v16 = vadd.f32 %v431_v12, %v1192_v63  ;;  %s558_s22 = sshll.u32 %s218_s21, 4  ;;  %s560_s24 = sshll.u32 %s556_s17, 4  ;;  %vm520_vm0 = vcmask 1040384   ;;  %s559_s22 = int_to_ptr.vmem [resolvable:$true] %s558_s22  ;;  %s561_s24 = int_to_ptr.hbm [resolvable:$true] %s560_s24 }
 0x11f   : > { %s529_s16 = scalar_lea.sflag [#allocation9], %s1097_s6  ;;  %s911_s29 = sshra.s32 %s561_s24, 4  ;;  %s912_s29 = int_to_ptr.hbm [resolvable:$true] %s911_s29 }
 0x120   : > { %v433_v20 = vadd.f32 %v432_v16, %v1205_v3  ;;  %v501_v21 = vadd.f32 %v500_v15, %v470_v14  ;;  %s913_s30 = scalar_lea.hbm %s912_s29, 2  ;;  %s917_s9 = scalar_lea.hbm %s1360_s3, 4 }
 0x121   : > { %p914_p12 = scmp.ne.s32.totalorder %s912_s29, %s913_s30  ;;  %p918_p5 = scmp.lt.s32.totalorder %s912_s29, %s1360_s3 }
 0x122   : > { %v434_v55 = vadd.f32 %v433_v20, %v1216_v17  ;;  %v502_v23 = vadd.f32 %v501_v21, %v471_v19  ;;  %p919_p7 = scmp.lt.s32.totalorder %s917_s9, %s913_s30 }
 0x123   : > { %p915_p13 = pnand %p914_p12, %p1067_p3 }
 0x124   : > { %v503_v59 = vadd.f32 %v502_v23, %v472_v22  ;;  %v435_v24 = vadd.f32 %v434_v55, %v1226_v32  ;;  %p920_p1 = por %p919_p7, %p918_p5 }
 0x125   : > { %p916_p0 = pneg %p915_p13 }
 0x126   : > { %v504_v63 = vadd.f32 %v503_v59, %v473_v25  ;;  %v436_v27 = vadd.f32 %v435_v24, %v355_v46 }
 0x127   : > { %p921_p4 = pnand %p920_p1, %p916_p0 }
 0x128   : > { %v437_v3 = vadd.f32 %v436_v27, %v1168_v56  ;;  %v505_v29 = vadd.f32 %v504_v63, %v474_v26  ;;  %v479_v56 = vmul.f32 %v1218_v18, %v1218_v18 }
 0x12a   : > { %v438_v17 = vadd.f32 %v437_v3, %v1181_v60  ;;  %v506_v31 = vadd.f32 %v505_v29, %v475_v28 }
 0x12c   : > { %v439_v32 = vadd.f32 %v438_v17, %v1194_v0  ;;  %v507_v35 = vadd.f32 %v506_v31, %v476_v30  ;;  %v480_v0 = vmul.f32 %v1228_v33, %v1228_v33 }
 0x12e   : > { %v508_v37 = vadd.f32 %v507_v35, %v477_v34  ;;  %v440_v38 = vadd.f32 %v439_v32, %v1207_v4  ;;  %v481_v4 = vmul.f32 %v1248_v47, %v1248_v47 }
 0x130   : > { %v441_v39 = vadd.f32 %v440_v38, %v1218_v18  ;;  %v509_v40 = vadd.f32 %v508_v37, %v478_v36 }
 0x132   : > { %v442_v60 = vadd.f32 %v441_v39, %v1228_v33  ;;  %v510_v41 = vadd.f32 %v509_v40, %v479_v56 }
 0x134   : > { %v511_v42 = vadd.f32 %v510_v41, %v480_v0  ;;  %v443_v43 = vadd.f32 %v442_v60, %v1248_v47 }
 0x136   : > { %v512_v45 = vadd.f32 %v511_v42, %v481_v4  ;;  %v444_v18 = vadd.f32 %v443_v43, %v1263_v6 }
 0x138   : > { %v445_v46 = vrot.slane %v444_v18, 4  ;;  %v513_v48 = vadd.f32 %v512_v45, %v482_v44 }
 0x13a   : > { %v446_v49 = vadd.f32 %v445_v46, %v444_v18  ;;  %v514_v50 = vrot.slane %v513_v48, 4 }
 0x13c   : > { %v447_v51 = vrot.slane %v446_v49, 2  ;;  %v515_v53 = vadd.f32 %v514_v50, %v513_v48 }
 0x13e   : > { %v448_v33 = vadd.f32 %v447_v51, %v446_v49  ;;  %v516_v54 = vrot.slane %v515_v53, 2 }
 0x140   : > { %v449_v47 = vrot.slane %v448_v33, 1  ;;  %v517_v57 = vadd.f32 %v516_v54, %v515_v53 }
 0x142   : > { %v518_v58 = vrot.slane %v517_v57, 1  ;;  %v450_v61 = vadd.f32 %v449_v47, %v448_v33 }
 0x144   : > { %v519_v1 = vadd.f32 %v518_v58, %v517_v57 }
 0x146   : > { %v521_v62 = vsel %vm520_vm0, %v450_v61, %v519_v1 }
 0x147   : > { %522 = vst [vmem:[%s218_s21] sm:$0x3] %v521_v62 }
 0x148   : > { %924 = shalt.err (!%p921_p4)
}
 0x149   : > { %750 = dma.vmem_to_hbm [thread:$0]  (%p1067_p3), %s559_s22, 32, %s561_s24, %s529_s16  }
 0x14a PF: > { %s572_s6 = sand.u32 1, %s959_s12   ;;  %p1366_p8 = scmp.ge.s32.totalorder %s971_s15, 2 }
 0x14b   : > { %s573_s20 = scalar_lea.sflag [#allocation4], %s572_s6 }
 0x14c   : > { %p762_p11 = pnand %p1366_p8, %p1033_p6 }
 0x14e   : > { %p763_p9 = pneg %p762_p11 }
 0x150   : > { %950 = dma.done.wait (%p763_p9), %s573_s20, 4096  }
 0x151   : > { %952 = vsyncadd (%p763_p9), %s573_s20, 4294963200  ;;  %s583_s25 = scalar_lea.sflag [#allocation9], %s572_s6 }
 0x152   : > { %954 = dma.done.wait (%p763_p9), %s583_s25, 32  }
 0x153   : > { %956 = vsyncadd (%p763_p9), %s583_s25, 4294967264  ;;  %p21_p3 = scmp.ge.s32.totalorder %s1051_s26, 4   ;;  %s1367_s12 = smov %s963_s13 }
 0x154   : > { %s1368_s13 = smov %s967_s14  ;;  %s1369_s14 = smov %s1063_s4 }
 0x155   : > { %s1370_s15 = smov %s1051_s26  ;;  %23 = sbr.rel (!%p21_p3) target bundleno = 8 (0x8), region = 94 }
 0x15a   :  { %589 = vsyncpa [#allocation3], 1 }
 0x15b   :  { %591 = vsyncpa [#allocation3 + $0x1], 1 }
 0x15c   :  { %592 = vsyncpa [#allocation6], 1 }
 0x15d   :  { %593 = vsyncpa [#allocation4], 1 }
 0x15e   :  { %595 = vsyncpa [#allocation4 + $0x1], 1 }
 0x15f   :  { %596 = vsyncpa [#allocation9], 1 }
 0x160   :  { %598 = vsyncpa [#allocation9 + $0x1], 1 }

</bundles_post_ra>
